<compile_context>
chip_gen: v5e
topology: v5e:2x2
jax: 0.10.0
libtpu: 0.0.40
codegen_flags: <defaults>
</compile_context>

<pallas_src>
import jax
import jax.numpy as jnp
from jax.experimental import pallas as pl
from jax.experimental.pallas import tpu as pltpu

_LANE = 128
_VMEM_LIMIT_BYTES = 32 << 20          # explicit scoped-VMEM limit (safe on v5e..v7x)
_VMEM_IO_BUDGET_BYTES = 24 << 20      # budget for double-buffered I/O blocks


def _resize_cell1_kernel(x_ref, h_ref, wl_ref, wr_ref, bl_ref, br_ref,
                         ox_ref, oh_ref):
    # x_ref:  (Cx,   TILE_M)   channels on sublanes, pixels on lanes
    # h_ref:  (Ch,   TILE_M)
    # wl_ref: (Cout, Cx)       1x1 conv weight with BN scale pre-folded
    # wr_ref: (Cout, Ch)
    # bl/br:  (Cout, 1)        folded BN bias
    # ox_ref, oh_ref: (Cout, TILE_M)  lane-dense outputs

    # left branch: relu -> (s*W) @ x -> + bias
    xl = jnp.maximum(x_ref[...], 0.0)
    yl = jnp.dot(wl_ref[...], xl, preferred_element_type=jnp.float32)
    ox_ref[...] = (yl + bl_ref[...]).astype(ox_ref.dtype)

    # right branch
    xr = jnp.maximum(h_ref[...], 0.0)
    yr = jnp.dot(wr_ref[...], xr, preferred_element_type=jnp.float32)
    oh_ref[...] = (yr + br_ref[...]).astype(oh_ref.dtype)


def _fold_bn_into_weight(w, gamma, beta, mean, var, eps=1e-3):
    """Fold eval-mode BN into the 1x1 conv weight; return (w', bias)."""
    scale = gamma.astype(jnp.float32) / jnp.sqrt(var.astype(jnp.float32) + eps)
    w_folded = w.astype(jnp.float32) * scale[:, None]
    bias = (beta.astype(jnp.float32) - mean.astype(jnp.float32) * scale)
    return w_folded, bias.reshape(-1, 1)


def _pad8(c):
    return ((c + 7) // 8) * 8


def _round_up(v, m):
    return ((v + m - 1) // m) * m


def _pick_tile_m(hw_padded, n, cx, ch, cout, out_bytes, tile_m_target):
    """Largest lane-multiple tile that fits the VMEM I/O budget and keeps
    >=2 grid steps (so both v7x TensorCores get work)."""
    # double-buffered per-lane bytes: inputs f32, outputs out_bytes wide
    per_lane = 2 * (4 * (_pad8(cx) + _pad8(ch)) + 2 * out_bytes * _pad8(cout))
    tm_vmem = (_VMEM_IO_BUDGET_BYTES // per_lane) // _LANE * _LANE
    tm = max(_LANE, min(tm_vmem, tile_m_target, hw_padded))
    tm = max(_LANE, (tm // _LANE) * _LANE)
    # megacore guarantee: at least 2 total grid steps when there is enough work
    if n * pl.cdiv(hw_padded, tm) < 2 and hw_padded >= 2 * _LANE:
        tm = _round_up((hw_padded + 1) // 2, _LANE)
    return tm


def resize_cell1_forward(x, h, params, tile_m_target=32768,
                         out_dtype=jnp.float32):
    """x: (N, Cx, H, W), h: (N, Ch, H, W), both NCHW float32.
    Returns (out_x, out_h), each (N, Cout, H, W) in out_dtype."""
    n, cx, hgt, wid = x.shape
    _, ch, _, _ = h.shape
    hw = hgt * wid

    # Fold BN scale into the conv weights; keep only the bias add in-kernel.
    wl, bl = _fold_bn_into_weight(params["w_left"], params["bn_left_gamma"],
                                  params["bn_left_beta"], params["bn_left_mean"],
                                  params["bn_left_var"])
    wr, br = _fold_bn_into_weight(params["w_right"], params["bn_right_gamma"],
                                  params["bn_right_beta"], params["bn_right_mean"],
                                  params["bn_right_var"])
    cout = wl.shape[0]

    # Free reshapes (contiguous last-two-dim merge); no transposes.
    x3 = x.reshape(n, cx, hw)
    h3 = h.reshape(n, ch, hw)

    # Lane-dense pixel axis: pad H*W up to a multiple of 128 if needed so
    # stores are unmasked vst (pad lanes are discarded on slice at the end).
    hw_padded = _round_up(hw, _LANE)
    if hw_padded != hw:
        pad = hw_padded - hw
        x3 = jnp.pad(x3, ((0, 0), (0, 0), (0, pad)))
        h3 = jnp.pad(h3, ((0, 0), (0, 0), (0, pad)))

    out_bytes = jnp.dtype(out_dtype).itemsize
    tm = _pick_tile_m(hw_padded, n, cx, ch, cout, out_bytes, tile_m_target)
    grid = (n, pl.cdiv(hw_padded, tm))

    out_x, out_h = pl.pallas_call(
        _resize_cell1_kernel,
        out_shape=(
            jax.ShapeDtypeStruct((n, cout, hw_padded), out_dtype),
            jax.ShapeDtypeStruct((n, cout, hw_padded), out_dtype),
        ),
        grid_spec=pltpu.PrefetchScalarGridSpec(
            num_scalar_prefetch=0,
            grid=grid,
            in_specs=[
                pl.BlockSpec((None, cx, tm), lambda b, m: (b, 0, m)),
                pl.BlockSpec((None, ch, tm), lambda b, m: (b, 0, m)),
                pl.BlockSpec((cout, cx), lambda b, m: (0, 0)),
                pl.BlockSpec((cout, ch), lambda b, m: (0, 0)),
                pl.BlockSpec((cout, 1), lambda b, m: (0, 0)),
                pl.BlockSpec((cout, 1), lambda b, m: (0, 0)),
            ],
            out_specs=[
                pl.BlockSpec((None, cout, tm), lambda b, m: (b, 0, m)),
                pl.BlockSpec((None, cout, tm), lambda b, m: (b, 0, m)),
            ],
        ),
        compiler_params=pltpu.CompilerParams(
            dimension_semantics=("parallel", "parallel"),
            vmem_limit_bytes=_VMEM_LIMIT_BYTES),
    )(x3, h3, wl, wr, bl, br)

    if hw_padded != hw:
        out_x = out_x[:, :, :hw]
        out_h = out_h[:, :, :hw]
    return (out_x.reshape(n, cout, hgt, wid),
            out_h.reshape(n, cout, hgt, wid))


def make_params(key, in_channels_x, in_channels_h, out_channels):
    ks = jax.random.split(key, 10)
    # torch Conv2d weight is (Cout, Cin, 1, 1); store as (Cout, Cin)
    w_left = jax.random.normal(ks[0], (out_channels, in_channels_x), jnp.float32) * 0.1
    w_right = jax.random.normal(ks[1], (out_channels, in_channels_h), jnp.float32) * 0.1
    return {
        "w_left": w_left,
        "w_right": w_right,
        "bn_left_gamma": 1.0 + 0.1 * jax.random.normal(ks[2], (out_channels,), jnp.float32),
        "bn_left_beta": 0.1 * jax.random.normal(ks[3], (out_channels,), jnp.float32),
        "bn_left_mean": 0.1 * jax.random.normal(ks[4], (out_channels,), jnp.float32),
        "bn_left_var": jnp.abs(1.0 + 0.1 * jax.random.normal(ks[5], (out_channels,), jnp.float32)),
        "bn_right_gamma": 1.0 + 0.1 * jax.random.normal(ks[6], (out_channels,), jnp.float32),
        "bn_right_beta": 0.1 * jax.random.normal(ks[7], (out_channels,), jnp.float32),
        "bn_right_mean": 0.1 * jax.random.normal(ks[8], (out_channels,), jnp.float32),
        "bn_right_var": jnp.abs(1.0 + 0.1 * jax.random.normal(ks[9], (out_channels,), jnp.float32)),
    }


if __name__ == "__main__":
    key = jax.random.PRNGKey(0)
    k_x, k_h, k_p = jax.random.split(key, 3)

    N, Cx, Ch, Cout, H, W = 2, 4, 6, 8, 16, 16
    x = jax.random.normal(k_x, (N, Cx, H, W), jnp.float32)
    h = jax.random.normal(k_h, (N, Ch, H, W), jnp.float32)
    params = make_params(k_p, Cx, Ch, Cout)

    out_x, out_h = resize_cell1_forward(x, h, params)
    jax.block_until_ready(out_x)
    jax.block_until_ready(out_h)

    # reference check against plain-JAX math (eval-mode BN, eps=1e-3)
    def ref_branch(inp, w, g, b, m, v, eps=1e-3):
        r = jnp.maximum(inp, 0.0)
        y = jnp.einsum("nchw,oc->nohw", r, w)
        scale = g / jnp.sqrt(v + eps)
        return y * scale[None, :, None, None] + (b - m * scale)[None, :, None, None]

    ref_x = ref_branch(x, params["w_left"], params["bn_left_gamma"],
                       params["bn_left_beta"], params["bn_left_mean"],
                       params["bn_left_var"])
    ref_h = ref_branch(h, params["w_right"], params["bn_right_gamma"],
                       params["bn_right_beta"], params["bn_right_mean"],
                       params["bn_right_var"])

    assert out_x.shape == (N, Cout, H, W) and out_h.shape == (N, Cout, H, W)
    assert jnp.max(jnp.abs(out_x - ref_x)) < 1e-4
    assert jnp.max(jnp.abs(out_h - ref_h)) < 1e-4

    print("KERNEL_OK")
</pallas_src>

<mosaic_0001>
module attributes {stable_mosaic.version = 11 : i64} {
  func.func @_resize_cell1_kernel(%arg0: i32, %arg1: i32, %arg2: memref<1x4x256xf32, #tpu.memory_space<vmem>>, %arg3: memref<1x6x256xf32, #tpu.memory_space<vmem>>, %arg4: memref<8x4xf32, #tpu.memory_space<vmem>>, %arg5: memref<8x6xf32, #tpu.memory_space<vmem>>, %arg6: memref<8x1xf32, #tpu.memory_space<vmem>>, %arg7: memref<8x1xf32, #tpu.memory_space<vmem>>, %arg8: memref<1x8x256xf32, #tpu.memory_space<vmem>>, %arg9: memref<1x8x256xf32, #tpu.memory_space<vmem>>) attributes {dimension_semantics = [#tpu.dimension_semantics<parallel>, #tpu.dimension_semantics<parallel>], iteration_bounds = array<i64: 2, 1>, scalar_prefetch = 0 : i64, scratch_operands = 0 : i64, tpu.core_type = #tpu.core_type<tc>, window_params = [{transform_indices = @transform_0, window_bounds = array<i64: 1, 4, 256>}, {transform_indices = @transform_1, window_bounds = array<i64: 1, 6, 256>}, {pipeline_mode = #tpu.pipeline_mode<synchronous>, transform_indices = @transform_2, window_bounds = array<i64: 8, 4>}, {pipeline_mode = #tpu.pipeline_mode<synchronous>, transform_indices = @transform_3, window_bounds = array<i64: 8, 6>}, {pipeline_mode = #tpu.pipeline_mode<synchronous>, transform_indices = @transform_4, window_bounds = array<i64: 8, 1>}, {pipeline_mode = #tpu.pipeline_mode<synchronous>, transform_indices = @transform_5, window_bounds = array<i64: 8, 1>}, {transform_indices = @transform_6, window_bounds = array<i64: 1, 8, 256>}, {transform_indices = @transform_7, window_bounds = array<i64: 1, 8, 256>}]} {
    %c0 = arith.constant 0 : index
    %c0_0 = arith.constant 0 : index
    %c0_1 = arith.constant 0 : index
    %0 = vector.load %arg2[%c0, %c0_0, %c0_1] : memref<1x4x256xf32, #tpu.memory_space<vmem>>, vector<1x4x256xf32>
    %1 = vector.shape_cast %0 : vector<1x4x256xf32> to vector<4x256xf32>
    %cst = arith.constant 0.000000e+00 : f32
    %2 = vector.broadcast %cst : f32 to vector<4x256xf32>
    %3 = arith.maximumf %1, %2 : vector<4x256xf32>
    %c0_2 = arith.constant 0 : index
    %c0_3 = arith.constant 0 : index
    %4 = vector.load %arg4[%c0_2, %c0_3] : memref<8x4xf32, #tpu.memory_space<vmem>>, vector<8x4xf32>
    %cst_4 = arith.constant dense<0.000000e+00> : vector<8x256xf32>
    %5 = tpu.matmul %4, %3, %cst_4 {dimension_numbers = #tpu.dot_dimension_numbers<[1], [0], [0], [1], [0, 0, 1, 1], [], []>} : vector<8x4xf32>, vector<4x256xf32>, vector<8x256xf32> -> vector<8x256xf32>
    %c0_5 = arith.constant 0 : index
    %c0_6 = arith.constant 0 : index
    %6 = vector.load %arg6[%c0_5, %c0_6] : memref<8x1xf32, #tpu.memory_space<vmem>>, vector<8x1xf32>
    %7 = vector.broadcast %6 : vector<8x1xf32> to vector<8x256xf32>
    %8 = arith.addf %5, %7 : vector<8x256xf32>
    %c0_7 = arith.constant 0 : index
    %c0_8 = arith.constant 0 : index
    %c0_9 = arith.constant 0 : index
    %9 = vector.load %arg8[%c0_7, %c0_8, %c0_9] : memref<1x8x256xf32, #tpu.memory_space<vmem>>, vector<1x8x256xf32>
    %10 = vector.shape_cast %9 : vector<1x8x256xf32> to vector<8x256xf32>
    %11 = vector.shape_cast %8 : vector<8x256xf32> to vector<1x8x256xf32>
    tpu.vector_store %arg8[%c0_7, %c0_8, %c0_9], %11 {strides = array<i32>} : memref<1x8x256xf32, #tpu.memory_space<vmem>>, vector<1x8x256xf32>,
    %c0_10 = arith.constant 0 : index
    %c0_11 = arith.constant 0 : index
    %c0_12 = arith.constant 0 : index
    %12 = vector.load %arg3[%c0_10, %c0_11, %c0_12] : memref<1x6x256xf32, #tpu.memory_space<vmem>>, vector<1x6x256xf32>
    %13 = vector.shape_cast %12 : vector<1x6x256xf32> to vector<6x256xf32>
    %cst_13 = arith.constant 0.000000e+00 : f32
    %14 = vector.broadcast %cst_13 : f32 to vector<6x256xf32>
    %15 = arith.maximumf %13, %14 : vector<6x256xf32>
    %c0_14 = arith.constant 0 : index
    %c0_15 = arith.constant 0 : index
    %16 = vector.load %arg5[%c0_14, %c0_15] : memref<8x6xf32, #tpu.memory_space<vmem>>, vector<8x6xf32>
    %cst_16 = arith.constant dense<0.000000e+00> : vector<8x256xf32>
    %17 = tpu.matmul %16, %15, %cst_16 {dimension_numbers = #tpu.dot_dimension_numbers<[1], [0], [0], [1], [0, 0, 1, 1], [], []>} : vector<8x6xf32>, vector<6x256xf32>, vector<8x256xf32> -> vector<8x256xf32>
    %c0_17 = arith.constant 0 : index
    %c0_18 = arith.constant 0 : index
    %18 = vector.load %arg7[%c0_17, %c0_18] : memref<8x1xf32, #tpu.memory_space<vmem>>, vector<8x1xf32>
    %19 = vector.broadcast %18 : vector<8x1xf32> to vector<8x256xf32>
    %20 = arith.addf %17, %19 : vector<8x256xf32>
    %c0_19 = arith.constant 0 : index
    %c0_20 = arith.constant 0 : index
    %c0_21 = arith.constant 0 : index
    %21 = vector.load %arg9[%c0_19, %c0_20, %c0_21] : memref<1x8x256xf32, #tpu.memory_space<vmem>>, vector<1x8x256xf32>
    %22 = vector.shape_cast %21 : vector<1x8x256xf32> to vector<8x256xf32>
    %23 = vector.shape_cast %20 : vector<8x256xf32> to vector<1x8x256xf32>
    tpu.vector_store %arg9[%c0_19, %c0_20, %c0_21], %23 {strides = array<i32>} : memref<1x8x256xf32, #tpu.memory_space<vmem>>, vector<1x8x256xf32>,
    return
  }
  func.func @transform_0(%arg0: i32, %arg1: i32) -> (i32, i32, i32) {
    %c0_i32 = arith.constant 0 : i32
    %c0_i32_0 = arith.constant 0 : i32
    return %arg0, %c0_i32, %arg1 : i32, i32, i32
  }
  func.func @transform_1(%arg0: i32, %arg1: i32) -> (i32, i32, i32) {
    %c0_i32 = arith.constant 0 : i32
    %c0_i32_0 = arith.constant 0 : i32
    return %arg0, %c0_i32, %arg1 : i32, i32, i32
  }
  func.func @transform_2(%arg0: i32, %arg1: i32) -> (i32, i32) {
    %c0_i32 = arith.constant 0 : i32
    %c0_i32_0 = arith.constant 0 : i32
    %c0_i32_1 = arith.constant 0 : i32
    return %c0_i32, %c0_i32_0 : i32, i32
  }
  func.func @transform_3(%arg0: i32, %arg1: i32) -> (i32, i32) {
    %c0_i32 = arith.constant 0 : i32
    %c0_i32_0 = arith.constant 0 : i32
    %c0_i32_1 = arith.constant 0 : i32
    return %c0_i32, %c0_i32_0 : i32, i32
  }
  func.func @transform_4(%arg0: i32, %arg1: i32) -> (i32, i32) {
    %c0_i32 = arith.constant 0 : i32
    %c0_i32_0 = arith.constant 0 : i32
    %c0_i32_1 = arith.constant 0 : i32
    return %c0_i32, %c0_i32_0 : i32, i32
  }
  func.func @transform_5(%arg0: i32, %arg1: i32) -> (i32, i32) {
    %c0_i32 = arith.constant 0 : i32
    %c0_i32_0 = arith.constant 0 : i32
    %c0_i32_1 = arith.constant 0 : i32
    return %c0_i32, %c0_i32_0 : i32, i32
  }
  func.func @transform_6(%arg0: i32, %arg1: i32) -> (i32, i32, i32) {
    %c0_i32 = arith.constant 0 : i32
    %c0_i32_0 = arith.constant 0 : i32
    return %arg0, %c0_i32, %arg1 : i32, i32, i32
  }
  func.func @transform_7(%arg0: i32, %arg1: i32) -> (i32, i32, i32) {
    %c0_i32 = arith.constant 0 : i32
    %c0_i32_0 = arith.constant 0 : i32
    return %arg0, %c0_i32, %arg1 : i32, i32, i32
  }
}

</mosaic_0001>

<bundles_post_ra>
// kernel: tpu_custom_call.1
= control target key start
LH: loop header
LB: loop body
LE: loop exit
PB: predicated region body
PF: predicated region fallthrough
CT: control target
= control target key end

     0   :  { %s1045_s0 = inlined_call_operand.vmem [shape: f32[2,4,256], index: 0, kind: input, shape index: {}]   ;;  %s1046_s1 = inlined_call_operand.vmem [shape: f32[2,6,256], index: 1, kind: input, shape index: {}]   ;;  %s1047_s2 = inlined_call_operand.vmem [shape: f32[8,4], index: 2, kind: input, shape index: {}]   ;;  %s1048_s3 = inlined_call_operand.vmem [shape: f32[8,6], index: 3, kind: input, shape index: {}]   ;;  %s1049_s4 = inlined_call_operand.vmem [shape: f32[8,1], index: 4, kind: input, shape index: {}]   ;;  %s1050_s5 = inlined_call_operand.vmem [shape: f32[8,1], index: 5, kind: input, shape index: {}]   ;;  %s1051_s6 = inlined_call_operand.hbm [shape: f32[2,8,256], index: 6, kind: output, shape index: {0}]   ;;  %s1052_s7 = inlined_call_operand.hbm [shape: f32[2,8,256], index: 7, kind: output, shape index: {1}]  }
   0x1   :  { %1053 = sst [smem:[#allocation8_spill]] %s1045_s0 }
   0x2   :  { %1054 = sst [smem:[#allocation9_spill]] %s1046_s1 }
   0x3   :  { %13 = vsyncpa [#allocation3], 0 }
   0x4   :  { %15 = vsyncpa [#allocation3 + $0x1], 0 }
   0x5   :  { %16 = vsyncpa [#allocation5], 0 }
   0x6   :  { %18 = vsyncpa [#allocation5 + $0x1], 0  ;;  %s903_s24 = smov 0   ;;  %s905_s25 = smov 0  }
   0x7   :  { %s907_s26 = smov 0   ;;  %s909_s27 = smov 0  }
   0x8   :  { %s911_s28 = smov 0   ;;  %s913_s29 = smov 0  }
   0x9 LB: > { %s657_s30 = sadd.s32 4294967295, %s860_s29   ;;  %s658_s8 = sadd.s32 4294967294, %s860_s29   ;;  %s860_s29 = sphi %s913_s29, %s24_s29   ;;  %s856_s28 = sphi %s911_s28, %s1063_s28   ;;  %s852_s27 = sphi %s909_s27, %s1062_s27   ;;  %s848_s26 = sphi %s907_s26, %s1061_s26   ;;  %s844_s25 = sphi %s905_s25, %s1060_s25   ;;  %s840_s24 = sphi %s903_s24, %s1059_s24  }
   0xa   : > { %s36_s9 = sadd.s32 1, %s856_s28  ;;  %s185_s10 = sadd.s32 1, %s848_s26 }
   0xb   : > { %p38_p0 = scmp.ge.s32.totalorder %s36_s9, 2  ;;  %p195_p1 = scmp.ne.s32.totalorder %s848_s26, %s844_s25 }
   0xc   : > { %p196_p2 = scmp.eq.s32.totalorder %s657_s30, 1  ;;  %p201_p3 = scmp.ne.s32.totalorder %s844_s25, %s840_s24 }
   0xd   : > { %s1065_s9 = smov (%p38_p0, %s36_s9), 0  ;;  %p202_p5 = scmp.eq.s32.totalorder %s658_s8, 1 }
   0xe   : > { %p943_p4 = por %p196_p2, %p195_p1  ;;  %s180_s12 = ssub.s32 %s856_s28, %s1065_s9 }
   0xf   : > { %p661_p6 = scmp.ge.s32.totalorder %s860_s29, 1  ;;  %p183_p7 = scmp.eq.s32.totalorder %s180_s12, 0 }
  0x10   : > { %p950_p8 = por %p202_p5, %p201_p3  ;;  %p286_p9 = scmp.lt.s32.totalorder %s860_s29, 3 }
  0x11   : > { %s956_s14 = scalar_select %p183_p7, %s848_s26, %s185_s10  }
  0x12   : > { %p287_p10 = pnand %p661_p6, %p286_p9 }
  0x13   : > { %p337_p11 = scmp.lt.s32.totalorder (!%p287_p10), %s852_s27, 1  ;;  %s1057_s0 = sld [smem:[#allocation8_spill]] (!%p287_p10) }
  0x14   : > { %290 = sbr.rel (%p287_p10) target bundleno = 184 (0xb8), region = 44  ;;  %s1058_s1 = sld [smem:[#allocation9_spill]] (!%p287_p10) }
  0x15   : > { %s686_s21 = sshll.u32 (!%p287_p10), %s852_s27, 4  ;;  %s770_s10 = scalar_lea.hbm (!%p287_p10), %s1052_s7, 32 }
  0x16   : > { %s522_s30 = scalar_lea.hbm (!%p287_p10), %s1052_s7, %s686_s21  ;;  %s505_s12 = scalar_lea.hbm (!%p287_p10), %s1051_s6, %s686_s21 }
  0x19   : > { %v361_v0 = vld [vmem:[%s1049_s4] sm:$0xff]  ;;  %v862_v1 = vmov 0   ;;  %s338_s17 = scalar_select %p337_p11, %s852_s27, 1  ;;  %vm437_vm0 = vcmask 1045504   ;;  %vm433_vm1 = vcmask 48128   ;;  %vm375_vm2 = vcmask 1043456  }
  0x1a   : > { %749 = vset.pattern.permute.xlu0 %v862_v1  ;;  %v426_v8 = vld [vmem:[%s1048_s3] sm:$0xff]  ;;  %vm371_vm3 = vcmask 31744  }
  0x1b   : > { %364 = vperm.xlu0 %749, %v361_v0   ;;  %s684_s18 = sshll.u32 %s338_s17, 3  ;;  %s685_s19 = sshll.u32 %s338_s17, 4  ;;  %v427_v9 = vld [vmem:[%s1050_s5] sm:$0xff] }
  0x1c   : > { %s344_s22 = scalar_lea.vmem %s1057_s0, %s684_s18  ;;  %s354_s8 = scalar_lea.vmem %s1058_s1, %s685_s19  ;;  %v360_v10 = vld [vmem:[%s1047_s2] sm:$0xff] }
  0x1d   : > { %v358_v2 = vld [vmem:[%s344_s22] sm:$0xff]  ;;  %v423_v4 = vld [vmem:[%s354_s8 + $0x8] sm:$0x3f]  ;;  %s979_s19 = sand.u32 1, %s844_s25   ;;  %s526_s17 = sshll.u32 %s522_s30, 4  ;;  %s527_s17 = int_to_ptr.hbm [resolvable:$true] %s526_s17 }
  0x1e   : > { %v422_v3 = vld [vmem:[%s354_s8] sm:$0x3f]  ;;  %v359_v5 = vmax.f32 %v358_v2, 0.0  ;;  %v425_v7 = vmax.f32 %v423_v4, 0.0  ;;  %s662_s20 = sshll.u32 %s979_s19, 4  ;;  %s509_s22 = sshll.u32 %s505_s12, 4  ;;  %s994_s22 = int_to_ptr.hbm [resolvable:$true] %s509_s22 }
  0x1f   : > { %v424_v6 = vmax.f32 %v422_v3, 0.0  ;;  %s335_s15 = scalar_lea.vmem [#allocation4], %s662_s20  ;;  %s989_s18 = scalar_lea.vmem [#allocation2], %s662_s20 }
  0x20   : > { %368 = vst [vmem:[#allocation1] ss:$2 sm:$0xff] %v359_v5  ;;  %674 = vmatpush.msk.msra.mxu3 %vm437_vm0, %v425_v7  ;;  %s524_s16 = sshll.u32 %s335_s15, 4  ;;  %s507_s27 = sshll.u32 %s989_s18, 4  ;;  %s525_s16 = int_to_ptr.vmem [resolvable:$true] %s524_s16  ;;  %s992_s27 = int_to_ptr.vmem [resolvable:$true] %s507_s27 }
  0x21   : > { %672 = vmatpush.msk.msra.mxu2 %vm437_vm0, %v424_v6  ;;  %675 = vmatmul.msk.f32.vlgmr.msra.gmra.mxu3 %vm433_vm1, %v426_v8  ;;  %s492_s20 = scalar_lea.sflag [#allocation5], %s979_s19  ;;  %s764_s21 = sshra.s32 %s527_s17, 4  ;;  %s765_s21 = int_to_ptr.hbm [resolvable:$true] %s764_s21 }
  0x22   : > { %673 = vmatmul.msk.f32.vlgmr.msra.gmra.mxu2 %vm433_vm1, %v426_v8  ;;  %s766_s23 = scalar_lea.hbm %s765_s21, 16  ;;  %p771_p1 = scmp.lt.s32.totalorder %s765_s21, %s1052_s7 }
  0x23   : > { %430 = vperm.xlu0 %749, %v427_v9   ;;  %p767_p12 = scmp.ne.s32.totalorder %s765_s21, %s766_s23  ;;  %p772_p2 = scmp.lt.s32.totalorder %s770_s10, %s766_s23 }
  0x25   : > { %p768_p13 = pnand %p767_p12, %p943_p4  ;;  %p773_p3 = por %p772_p2, %p771_p1 }
  0x27   : > { %v369_v11 = vld.sshfl [vmem:[#allocation1] sm:$0xff pattern:$0x75316420]  ;;  %v370_v12 = vld.sshfl [vmem:[#allocation1 + $0x8] sm:$0xff pattern:$0x75316420]  ;;  %p769_p0 = pneg %p768_p13 }
  0x28   : > { %668 = vmatpush.msk.msra.mxu0 %vm375_vm2, %v369_v11  ;;  %670 = vmatpush.msk.msra.mxu1 %vm375_vm2, %v370_v12 }
  0x29   : > { %669 = vmatmul.msk.f32.vlgmr.msra.gmra.mxu0 %vm371_vm3, %v360_v10  ;;  %671 = vmatmul.msk.f32.vlgmr.msra.gmra.mxu1 %vm371_vm3, %v360_v10  ;;  %p774_p5 = pnand %p773_p3, %p769_p0 }
  0x8d   : > { %v365_v13 = vpop.permute.xlu0 %364 }
  0x95   : > { %v431_v14 = vpop.permute.xlu0 %430 }
  0xa4   : > { %v481_v16 = vpop.f32.mrf.mxu3 }
  0xa5   : > { %v461_v15 = vpop.f32.mrf.mxu2  ;;  %v482_v18 = vadd.f32 %v481_v16, %v431_v14 }
  0xa6   : > { %v462_v17 = vadd.f32 %v461_v15, %v431_v14  ;;  %v397_v19 = vpop.f32.mrf.mxu0  ;;  %v417_v20 = vpop.f32.mrf.mxu1 }
  0xa7   : > { %v398_v21 = vadd.f32 %v397_v19, %v365_v13  ;;  %v418_v22 = vadd.f32 %v417_v20, %v365_v13  ;;  %485 = vst [vmem:[%s335_s15 + $0x8] sm:$0xff] %v482_v18 }
  0xa8   : > { %484 = vst [vmem:[%s335_s15] sm:$0xff] %v462_v17 }
  0xa9   : > { %420 = vst [vmem:[%s989_s18] sm:$0xff] %v398_v21 }
  0xaa   : > { %777 = shalt.err (!%p774_p5)
}
  0xab   : > { %689 = dma.vmem_to_hbm [thread:$0]  (%p943_p4), %s525_s16, 256, %s527_s17, %s492_s20   ;;  %421 = vst [vmem:[%s989_s18 + $0x8] sm:$0xff] %v418_v22 }
  0xac   : > { %s487_s15 = scalar_lea.sflag [#allocation3], %s979_s19  ;;  %s792_s1 = sshra.s32 %s994_s22, 4  ;;  %s793_s1 = int_to_ptr.hbm [resolvable:$true] %s792_s1 }
  0xad   : > { %s794_s30 = scalar_lea.hbm %s793_s1, 16  ;;  %s798_s23 = scalar_lea.hbm %s1051_s6, 32 }
  0xae   : > { %p795_p6 = scmp.ne.s32.totalorder %s793_s1, %s794_s30  ;;  %p799_p10 = scmp.lt.s32.totalorder %s793_s1, %s1051_s6 }
  0xaf   : > { %p800_p11 = scmp.lt.s32.totalorder %s798_s23, %s794_s30 }
  0xb0   : > { %p796_p7 = pnand %p795_p6, %p943_p4 }
  0xb1   : > { %p801_p12 = por %p800_p11, %p799_p10 }
  0xb2   : > { %p797_p9 = pneg %p796_p7 }
  0xb4   : > { %p802_p13 = pnand %p801_p12, %p797_p9 }
  0xb6   : > { %805 = shalt.err (!%p802_p13)
}
  0xb7   : > { %688 = dma.vmem_to_hbm [thread:$0]  (%p943_p4), %s992_s27, 256, %s994_s22, %s487_s15  }
  0xb8 PF: > { %p699_p0 = scmp.ge.s32.totalorder %s860_s29, 2  ;;  %s538_s19 = sand.u32 1, %s840_s24  }
  0xb9   : > { %s539_s16 = scalar_lea.sflag [#allocation3], %s538_s19 }
  0xba   : > { %p693_p1 = pnand %p699_p0, %p950_p8 }
  0xbc   : > { %p694_p2 = pneg %p693_p1 }
  0xbe   : > { %831 = dma.done.wait (%p694_p2), %s539_s16, 256  }
  0xbf   : > { %833 = vsyncadd (%p694_p2), %s539_s16, 4294967040  ;;  %s549_s1 = scalar_lea.sflag [#allocation5], %s538_s19 }
  0xc0   : > { %835 = dma.done.wait (%p694_p2), %s549_s1, 256  }
  0xc1   : > { %837 = vsyncadd (%p694_p2), %s549_s1, 4294967040  ;;  %s24_s29 = sadd.s32 1, %s860_s29   ;;  %s1059_s24 = smov %s844_s25 }
  0xc2   : > { %p21_p3 = scmp.ge.s32.totalorder %s24_s29, 4   ;;  %s1060_s25 = smov %s848_s26 }
  0xc3   : > { %s1061_s26 = smov %s956_s14  ;;  %s1062_s27 = smov %s856_s28 }
  0xc4   : > { %s1063_s28 = smov %s1065_s9  ;;  %23 = sbr.rel (!%p21_p3) target bundleno = 9 (0x9), region = 99 }
  0xc9   :  { %555 = vsyncpa [#allocation3], 1 }
  0xca   :  { %557 = vsyncpa [#allocation3 + $0x1], 1 }
  0xcb   :  { %558 = vsyncpa [#allocation5], 1 }
  0xcc   :  { %560 = vsyncpa [#allocation5 + $0x1], 1 }

</bundles_post_ra>
